<compile_context>
chip_gen: v7x
topology: tpu7x:2x2x1
jax: 0.10.0
libtpu: 0.0.40
codegen_flags: <defaults>
</compile_context>

<pallas_src>
import jax
import jax.numpy as jnp
from jax.experimental import pallas as pl
from jax.experimental.pallas import tpu as pltpu

# ---- module hyper-parameters (from train.py) ----
BLOCK_SIZE = 8                    # max sequence length T
N_EMBD = 64                       # embedding dim C
NUM_HEADS = 4
HEAD_SIZE = N_EMBD // NUM_HEADS   # 16


def mha_kernel(x_ref, wqkv_ref, wproj_ref, bproj_ref, o_ref):
    """One grid step == Bt batch elements.

    x_ref:    (Bt, T, C)
    wqkv_ref: (C, 3C)   fused [Wq*scale | Wk | Wv], heads along columns in each C
    wproj:    (C, C)
    bproj:    (1, C)
    o_ref:    (Bt, T, C)
    """
    Bt, T, C = x_ref.shape

    # ---- fused QKV projection on the full (Bt*T, C) slab (lane-dense N=3C).
    # The 1/sqrt(C) attention scale is pre-folded into the Wq columns.
    x2 = x_ref[...].reshape(Bt * T, C)
    qkv = jnp.dot(x2, wqkv_ref[...], preferred_element_type=jnp.float32)   # (Bt*T, 3C)

    # ---- additive causal mask (0 where allowed, -1e30 where masked), hoisted
    row = jax.lax.broadcasted_iota(jnp.int32, (T, T), 0)
    col = jax.lax.broadcasted_iota(jnp.int32, (T, T), 1)
    mask = jnp.where(row >= col, 0.0, -1e30).astype(jnp.float32)[None, :, :]  # (1,T,T)

    # ---- per-head attention, batched over Bt with single-batch-dim einsums
    head_outs = []
    for h in range(NUM_HEADS):
        lo, hi = h * HEAD_SIZE, (h + 1) * HEAD_SIZE
        q = qkv[:, lo:hi].reshape(Bt, T, HEAD_SIZE)
        k = qkv[:, C + lo:C + hi].reshape(Bt, T, HEAD_SIZE)
        v = qkv[:, 2 * C + lo:2 * C + hi].reshape(Bt, T, HEAD_SIZE)

        s = jnp.einsum('bqd,bkd->bqk', q, k,
                       preferred_element_type=jnp.float32) + mask           # (Bt,T,T)
        p = jnp.exp(s - jnp.max(s, axis=-1, keepdims=True))
        inv = pl.reciprocal(jnp.sum(p, axis=-1, keepdims=True), approx=False)
        p = p * inv
        # TODO(synk): attention-weight dropout skipped (inference / eval mode)

        head_outs.append(jnp.einsum('bqk,bkd->bqd', p, v,
                                    preferred_element_type=jnp.float32))    # (Bt,T,hs)

    # ---- single full-width output projection (K=64), one MXU pass + bias
    cat = jnp.concatenate(head_outs, axis=-1).reshape(Bt * T, C)            # (Bt*T, C)
    out = jnp.dot(cat, wproj_ref[...],
                  preferred_element_type=jnp.float32) + bproj_ref[...]
    # TODO(synk): residual dropout skipped (inference / eval mode)

    o_ref[...] = out.reshape(Bt, T, C).astype(o_ref.dtype)


def _choose_batch_tile(B, T, max_rows=4096, min_steps=4):
    """Largest Bt with Bt*T <= max_rows (~1 MiB f32 x-block, inside every
    generation's VMEM budget once vmem_limit is raised), while keeping at least
    `min_steps` grid steps so the DMA pipeline overlaps with compute and both
    v7x TensorCores get >= 2 steps each."""
    bt = max(1, min(B, max_rows // T))
    while bt > 1 and pl.cdiv(B, bt) < min_steps:
        bt = pl.cdiv(bt, 2)
    return bt


def multi_head_attention(x, wq, wk, wv, wproj, bproj, *, batch_tile=None):
    B, T, C = x.shape
    assert T == BLOCK_SIZE and C == N_EMBD

    # One-time weight transforms (not per-call input pre-scaling):
    #   * fuse [Wq | Wk | Wv] into one lane-dense (C, 3C) weight
    #   * fold the 1/sqrt(C) attention scale (PyTorch uses C = n_embd) into Wq
    scale = C ** -0.5
    wqkv = jnp.concatenate([wq * scale, wk, wv], axis=1)       # (C, 3C)
    bproj2 = bproj.reshape(1, C)

    if batch_tile is None:
        batch_tile = _choose_batch_tile(B, T)
    num_blocks = pl.cdiv(B, batch_tile)

    # Pad the batch up to a multiple of the tile instead of shrinking the tile
    # to a divisor of B (keeps full-size MXU slabs for awkward / prime B).
    b_pad = num_blocks * batch_tile
    x_in = x if b_pad == B else jnp.pad(x, ((0, b_pad - B), (0, 0), (0, 0)))

    grid_spec = pltpu.PrefetchScalarGridSpec(
        num_scalar_prefetch=0,
        grid=(num_blocks,),
        in_specs=[
            pl.BlockSpec((batch_tile, T, C), lambda b: (b, 0, 0)),   # x
            pl.BlockSpec((C, 3 * C), lambda b: (0, 0)),              # Wqkv (fused)
            pl.BlockSpec((C, C), lambda b: (0, 0)),                  # Wproj
            pl.BlockSpec((1, C), lambda b: (0, 0)),                  # bproj
        ],
        out_specs=pl.BlockSpec((batch_tile, T, C), lambda b: (b, 0, 0)),
    )

    out = pl.pallas_call(
        mha_kernel,
        out_shape=jax.ShapeDtypeStruct((b_pad, T, C), x.dtype),
        grid_spec=grid_spec,
        compiler_params=pltpu.CompilerParams(
            dimension_semantics=("parallel",),
            vmem_limit_bytes=48 * 1024 * 1024),
    )(x_in, wqkv, wproj, bproj2)

    return out if b_pad == B else out[:B]


def reference_mha(x, wq, wk, wv, wproj, bproj):
    """Pure-JAX reference mirroring the PyTorch forward (dropout = identity)."""
    B, T, C = x.shape
    scale = C ** -0.5
    q = x @ wq
    k = x @ wk
    v = x @ wv
    tril = jnp.tril(jnp.ones((T, T)))
    outs = []
    for h in range(NUM_HEADS):
        sl = slice(h * HEAD_SIZE, (h + 1) * HEAD_SIZE)
        wei = (q[..., sl] @ jnp.swapaxes(k[..., sl], -2, -1)) * scale
        wei = jnp.where(tril == 0, -jnp.inf, wei)
        wei = jax.nn.softmax(wei, axis=-1)
        outs.append(wei @ v[..., sl])
    out = jnp.concatenate(outs, axis=-1)
    return out @ wproj + bproj


if __name__ == "__main__":
    key = jax.random.PRNGKey(0)
    kx, kq, kk, kv, kp, kb = jax.random.split(key, 6)

    B, T, C = 8, BLOCK_SIZE, N_EMBD          # small, but exercises the tiled path
    x = jax.random.normal(kx, (B, T, C), dtype=jnp.float32)

    std = C ** -0.5
    wq = jax.random.normal(kq, (C, C), dtype=jnp.float32) * std
    wk = jax.random.normal(kk, (C, C), dtype=jnp.float32) * std
    wv = jax.random.normal(kv, (C, C), dtype=jnp.float32) * std
    wproj = jax.random.normal(kp, (C, C), dtype=jnp.float32) * std
    bproj = jax.random.normal(kb, (C,), dtype=jnp.float32) * std

    out = multi_head_attention(x, wq, wk, wv, wproj, bproj)
    out = jax.block_until_ready(out)

    ref = reference_mha(x, wq, wk, wv, wproj, bproj)
    assert out.shape == (B, T, C)
    # Exact reciprocal + f32 MXU operands -> tight tolerance restored.
    assert jnp.allclose(out, ref, atol=1e-4, rtol=1e-4), "mismatch vs reference"

    print("KERNEL_OK")
</pallas_src>

<mosaic_0001>
module attributes {stable_mosaic.version = 11 : i64} {
  func.func @mha_kernel(%arg0: i32, %arg1: memref<2x8x64xf32, #tpu.memory_space<vmem>>, %arg2: memref<64x192xf32, #tpu.memory_space<vmem>>, %arg3: memref<64x64xf32, #tpu.memory_space<vmem>>, %arg4: memref<1x64xf32, #tpu.memory_space<vmem>>, %arg5: memref<2x8x64xf32, #tpu.memory_space<vmem>>) attributes {dimension_semantics = [#tpu.dimension_semantics<parallel>], iteration_bounds = array<i64: 4>, scalar_prefetch = 0 : i64, scratch_operands = 0 : i64, tpu.core_type = #tpu.core_type<tc>, window_params = [{transform_indices = @transform_0, window_bounds = array<i64: 2, 8, 64>}, {pipeline_mode = #tpu.pipeline_mode<synchronous>, transform_indices = @transform_1, window_bounds = array<i64: 64, 192>}, {pipeline_mode = #tpu.pipeline_mode<synchronous>, transform_indices = @transform_2, window_bounds = array<i64: 64, 64>}, {pipeline_mode = #tpu.pipeline_mode<synchronous>, transform_indices = @transform_3, window_bounds = array<i64: 1, 64>}, {transform_indices = @transform_4, window_bounds = array<i64: 2, 8, 64>}]} {
    %c0 = arith.constant 0 : index
    %c0_0 = arith.constant 0 : index
    %c0_1 = arith.constant 0 : index
    %0 = vector.load %arg1[%c0, %c0_0, %c0_1] : memref<2x8x64xf32, #tpu.memory_space<vmem>>, vector<2x8x64xf32>
    %1 = vector.shape_cast %0 : vector<2x8x64xf32> to vector<16x64xf32>
    %c0_2 = arith.constant 0 : index
    %c0_3 = arith.constant 0 : index
    %2 = vector.load %arg2[%c0_2, %c0_3] : memref<64x192xf32, #tpu.memory_space<vmem>>, vector<64x192xf32>
    %cst = arith.constant dense<0.000000e+00> : vector<16x192xf32>
    %3 = tpu.matmul %1, %2, %cst {dimension_numbers = #tpu.dot_dimension_numbers<[1], [0], [0], [1], [0, 0, 1, 1], [], []>} : vector<16x64xf32>, vector<64x192xf32>, vector<16x192xf32> -> vector<16x192xf32>
    %4 = tpu.iota {dimensions = array<i32: 0>} : vector<8x8xi32>
    %5 = tpu.iota {dimensions = array<i32: 1>} : vector<8x8xi32>
    %6 = arith.cmpi sge, %4, %5 : vector<8x8xi32>
    %cst_4 = arith.constant 0.000000e+00 : f32
    %cst_5 = arith.constant -1.000000e+30 : f32
    %7 = vector.broadcast %cst_4 : f32 to vector<8x8xf32>
    %8 = vector.broadcast %cst_5 : f32 to vector<8x8xf32>
    %9 = arith.select %6, %7, %8 : vector<8x8xi1>, vector<8x8xf32>
    %10 = vector.shape_cast %9 : vector<8x8xf32> to vector<1x8x8xf32>
    %11 = vector.extract_strided_slice %3 {offsets = [0, 0], sizes = [16, 16], strides = [1, 1]} : vector<16x192xf32> to vector<16x16xf32>
    %12 = vector.shape_cast %11 : vector<16x16xf32> to vector<2x8x16xf32>
    %13 = vector.extract_strided_slice %3 {offsets = [0, 64], sizes = [16, 16], strides = [1, 1]} : vector<16x192xf32> to vector<16x16xf32>
    %14 = vector.shape_cast %13 : vector<16x16xf32> to vector<2x8x16xf32>
    %15 = vector.extract_strided_slice %3 {offsets = [0, 128], sizes = [16, 16], strides = [1, 1]} : vector<16x192xf32> to vector<16x16xf32>
    %16 = vector.shape_cast %15 : vector<16x16xf32> to vector<2x8x16xf32>
    "tpu.trace_start"() <{level = 10 : i32, message = "bqd,bkd->bqk"}> : () -> ()
    %cst_6 = arith.constant dense<0.000000e+00> : vector<2x8x8xf32>
    %17 = tpu.matmul %12, %14, %cst_6 {dimension_numbers = #tpu.dot_dimension_numbers<[2], [2], [1], [1], [0, 0, 0, 1, 1, 1], [0], [0]>} : vector<2x8x16xf32>, vector<2x8x16xf32>, vector<2x8x8xf32> -> vector<2x8x8xf32>
    "tpu.trace_stop"() : () -> ()
    %18 = vector.broadcast %10 : vector<1x8x8xf32> to vector<2x8x8xf32>
    %19 = arith.addf %17, %18 : vector<2x8x8xf32>
    %cst_7 = arith.constant dense<0xFF800000> : vector<2x8xf32>
    %20 = vector.multi_reduction <maximumf>, %19, %cst_7 [2] : vector<2x8x8xf32> to vector<2x8xf32>
    %21 = vector.shape_cast %20 : vector<2x8xf32> to vector<2x8x1xf32>
    %22 = vector.broadcast %21 : vector<2x8x1xf32> to vector<2x8x8xf32>
    %23 = arith.subf %19, %22 : vector<2x8x8xf32>
    %24 = math.exp %23 : vector<2x8x8xf32>
    %cst_8 = arith.constant dense<0.000000e+00> : vector<2x8xf32>
    %25 = vector.multi_reduction <add>, %24, %cst_8 [2] : vector<2x8x8xf32> to vector<2x8xf32>
    %26 = vector.shape_cast %25 : vector<2x8xf32> to vector<2x8x1xf32>
    %27 = tpu.reciprocal %26 : vector<2x8x1xf32> -> vector<2x8x1xf32>
    %28 = vector.broadcast %27 : vector<2x8x1xf32> to vector<2x8x8xf32>
    %29 = arith.mulf %24, %28 : vector<2x8x8xf32>
    "tpu.trace_start"() <{level = 10 : i32, message = "bqk,bkd->bqd"}> : () -> ()
    %cst_9 = arith.constant dense<0.000000e+00> : vector<2x8x16xf32>
    %30 = tpu.matmul %29, %16, %cst_9 {dimension_numbers = #tpu.dot_dimension_numbers<[2], [1], [1], [2], [0, 0, 0, 1, 1, 2], [0], [0]>} : vector<2x8x8xf32>, vector<2x8x16xf32>, vector<2x8x16xf32> -> vector<2x8x16xf32>
    "tpu.trace_stop"() : () -> ()
    %31 = vector.extract_strided_slice %3 {offsets = [0, 16], sizes = [16, 16], strides = [1, 1]} : vector<16x192xf32> to vector<16x16xf32>
    %32 = vector.shape_cast %31 : vector<16x16xf32> to vector<2x8x16xf32>
    %33 = vector.extract_strided_slice %3 {offsets = [0, 80], sizes = [16, 16], strides = [1, 1]} : vector<16x192xf32> to vector<16x16xf32>
    %34 = vector.shape_cast %33 : vector<16x16xf32> to vector<2x8x16xf32>
    %35 = vector.extract_strided_slice %3 {offsets = [0, 144], sizes = [16, 16], strides = [1, 1]} : vector<16x192xf32> to vector<16x16xf32>
    %36 = vector.shape_cast %35 : vector<16x16xf32> to vector<2x8x16xf32>
    "tpu.trace_start"() <{level = 10 : i32, message = "bqd,bkd->bqk"}> : () -> ()
    %cst_10 = arith.constant dense<0.000000e+00> : vector<2x8x8xf32>
    %37 = tpu.matmul %32, %34, %cst_10 {dimension_numbers = #tpu.dot_dimension_numbers<[2], [2], [1], [1], [0, 0, 0, 1, 1, 1], [0], [0]>} : vector<2x8x16xf32>, vector<2x8x16xf32>, vector<2x8x8xf32> -> vector<2x8x8xf32>
    "tpu.trace_stop"() : () -> ()
    %38 = vector.broadcast %10 : vector<1x8x8xf32> to vector<2x8x8xf32>
    %39 = arith.addf %37, %38 : vector<2x8x8xf32>
    %cst_11 = arith.constant dense<0xFF800000> : vector<2x8xf32>
    %40 = vector.multi_reduction <maximumf>, %39, %cst_11 [2] : vector<2x8x8xf32> to vector<2x8xf32>
    %41 = vector.shape_cast %40 : vector<2x8xf32> to vector<2x8x1xf32>
    %42 = vector.broadcast %41 : vector<2x8x1xf32> to vector<2x8x8xf32>
    %43 = arith.subf %39, %42 : vector<2x8x8xf32>
    %44 = math.exp %43 : vector<2x8x8xf32>
    %cst_12 = arith.constant dense<0.000000e+00> : vector<2x8xf32>
    %45 = vector.multi_reduction <add>, %44, %cst_12 [2] : vector<2x8x8xf32> to vector<2x8xf32>
    %46 = vector.shape_cast %45 : vector<2x8xf32> to vector<2x8x1xf32>
    %47 = tpu.reciprocal %46 : vector<2x8x1xf32> -> vector<2x8x1xf32>
    %48 = vector.broadcast %47 : vector<2x8x1xf32> to vector<2x8x8xf32>
    %49 = arith.mulf %44, %48 : vector<2x8x8xf32>
    "tpu.trace_start"() <{level = 10 : i32, message = "bqk,bkd->bqd"}> : () -> ()
    %cst_13 = arith.constant dense<0.000000e+00> : vector<2x8x16xf32>
    %50 = tpu.matmul %49, %36, %cst_13 {dimension_numbers = #tpu.dot_dimension_numbers<[2], [1], [1], [2], [0, 0, 0, 1, 1, 2], [0], [0]>} : vector<2x8x8xf32>, vector<2x8x16xf32>, vector<2x8x16xf32> -> vector<2x8x16xf32>
    "tpu.trace_stop"() : () -> ()
    %51 = vector.extract_strided_slice %3 {offsets = [0, 32], sizes = [16, 16], strides = [1, 1]} : vector<16x192xf32> to vector<16x16xf32>
    %52 = vector.shape_cast %51 : vector<16x16xf32> to vector<2x8x16xf32>
    %53 = vector.extract_strided_slice %3 {offsets = [0, 96], sizes = [16, 16], strides = [1, 1]} : vector<16x192xf32> to vector<16x16xf32>
    %54 = vector.shape_cast %53 : vector<16x16xf32> to vector<2x8x16xf32>
    %55 = vector.extract_strided_slice %3 {offsets = [0, 160], sizes = [16, 16], strides = [1, 1]} : vector<16x192xf32> to vector<16x16xf32>
    %56 = vector.shape_cast %55 : vector<16x16xf32> to vector<2x8x16xf32>
    "tpu.trace_start"() <{level = 10 : i32, message = "bqd,bkd->bqk"}> : () -> ()
    %cst_14 = arith.constant dense<0.000000e+00> : vector<2x8x8xf32>
    %57 = tpu.matmul %52, %54, %cst_14 {dimension_numbers = #tpu.dot_dimension_numbers<[2], [2], [1], [1], [0, 0, 0, 1, 1, 1], [0], [0]>} : vector<2x8x16xf32>, vector<2x8x16xf32>, vector<2x8x8xf32> -> vector<2x8x8xf32>
    "tpu.trace_stop"() : () -> ()
    %58 = vector.broadcast %10 : vector<1x8x8xf32> to vector<2x8x8xf32>
    %59 = arith.addf %57, %58 : vector<2x8x8xf32>
    %cst_15 = arith.constant dense<0xFF800000> : vector<2x8xf32>
    %60 = vector.multi_reduction <maximumf>, %59, %cst_15 [2] : vector<2x8x8xf32> to vector<2x8xf32>
    %61 = vector.shape_cast %60 : vector<2x8xf32> to vector<2x8x1xf32>
    %62 = vector.broadcast %61 : vector<2x8x1xf32> to vector<2x8x8xf32>
    %63 = arith.subf %59, %62 : vector<2x8x8xf32>
    %64 = math.exp %63 : vector<2x8x8xf32>
    %cst_16 = arith.constant dense<0.000000e+00> : vector<2x8xf32>
    %65 = vector.multi_reduction <add>, %64, %cst_16 [2] : vector<2x8x8xf32> to vector<2x8xf32>
    %66 = vector.shape_cast %65 : vector<2x8xf32> to vector<2x8x1xf32>
    %67 = tpu.reciprocal %66 : vector<2x8x1xf32> -> vector<2x8x1xf32>
    %68 = vector.broadcast %67 : vector<2x8x1xf32> to vector<2x8x8xf32>
    %69 = arith.mulf %64, %68 : vector<2x8x8xf32>
    "tpu.trace_start"() <{level = 10 : i32, message = "bqk,bkd->bqd"}> : () -> ()
    %cst_17 = arith.constant dense<0.000000e+00> : vector<2x8x16xf32>
    %70 = tpu.matmul %69, %56, %cst_17 {dimension_numbers = #tpu.dot_dimension_numbers<[2], [1], [1], [2], [0, 0, 0, 1, 1, 2], [0], [0]>} : vector<2x8x8xf32>, vector<2x8x16xf32>, vector<2x8x16xf32> -> vector<2x8x16xf32>
    "tpu.trace_stop"() : () -> ()
    %71 = vector.extract_strided_slice %3 {offsets = [0, 48], sizes = [16, 16], strides = [1, 1]} : vector<16x192xf32> to vector<16x16xf32>
    %72 = vector.shape_cast %71 : vector<16x16xf32> to vector<2x8x16xf32>
    %73 = vector.extract_strided_slice %3 {offsets = [0, 112], sizes = [16, 16], strides = [1, 1]} : vector<16x192xf32> to vector<16x16xf32>
    %74 = vector.shape_cast %73 : vector<16x16xf32> to vector<2x8x16xf32>
    %75 = vector.extract_strided_slice %3 {offsets = [0, 176], sizes = [16, 16], strides = [1, 1]} : vector<16x192xf32> to vector<16x16xf32>
    %76 = vector.shape_cast %75 : vector<16x16xf32> to vector<2x8x16xf32>
    "tpu.trace_start"() <{level = 10 : i32, message = "bqd,bkd->bqk"}> : () -> ()
    %cst_18 = arith.constant dense<0.000000e+00> : vector<2x8x8xf32>
    %77 = tpu.matmul %72, %74, %cst_18 {dimension_numbers = #tpu.dot_dimension_numbers<[2], [2], [1], [1], [0, 0, 0, 1, 1, 1], [0], [0]>} : vector<2x8x16xf32>, vector<2x8x16xf32>, vector<2x8x8xf32> -> vector<2x8x8xf32>
    "tpu.trace_stop"() : () -> ()
    %78 = vector.broadcast %10 : vector<1x8x8xf32> to vector<2x8x8xf32>
    %79 = arith.addf %77, %78 : vector<2x8x8xf32>
    %cst_19 = arith.constant dense<0xFF800000> : vector<2x8xf32>
    %80 = vector.multi_reduction <maximumf>, %79, %cst_19 [2] : vector<2x8x8xf32> to vector<2x8xf32>
    %81 = vector.shape_cast %80 : vector<2x8xf32> to vector<2x8x1xf32>
    %82 = vector.broadcast %81 : vector<2x8x1xf32> to vector<2x8x8xf32>
    %83 = arith.subf %79, %82 : vector<2x8x8xf32>
    %84 = math.exp %83 : vector<2x8x8xf32>
    %cst_20 = arith.constant dense<0.000000e+00> : vector<2x8xf32>
    %85 = vector.multi_reduction <add>, %84, %cst_20 [2] : vector<2x8x8xf32> to vector<2x8xf32>
    %86 = vector.shape_cast %85 : vector<2x8xf32> to vector<2x8x1xf32>
    %87 = tpu.reciprocal %86 : vector<2x8x1xf32> -> vector<2x8x1xf32>
    %88 = vector.broadcast %87 : vector<2x8x1xf32> to vector<2x8x8xf32>
    %89 = arith.mulf %84, %88 : vector<2x8x8xf32>
    "tpu.trace_start"() <{level = 10 : i32, message = "bqk,bkd->bqd"}> : () -> ()
    %cst_21 = arith.constant dense<0.000000e+00> : vector<2x8x16xf32>
    %90 = tpu.matmul %89, %76, %cst_21 {dimension_numbers = #tpu.dot_dimension_numbers<[2], [1], [1], [2], [0, 0, 0, 1, 1, 2], [0], [0]>} : vector<2x8x8xf32>, vector<2x8x16xf32>, vector<2x8x16xf32> -> vector<2x8x16xf32>
    "tpu.trace_stop"() : () -> ()
    %91 = tpu.concatenate %30, %50, %70, %90 in 2 : vector<2x8x16xf32>, vector<2x8x16xf32>, vector<2x8x16xf32>, vector<2x8x16xf32> -> vector<2x8x64xf32>
    %92 = vector.shape_cast %91 : vector<2x8x64xf32> to vector<16x64xf32>
    %c0_22 = arith.constant 0 : index
    %c0_23 = arith.constant 0 : index
    %93 = vector.load %arg3[%c0_22, %c0_23] : memref<64x64xf32, #tpu.memory_space<vmem>>, vector<64x64xf32>
    %cst_24 = arith.constant dense<0.000000e+00> : vector<16x64xf32>
    %94 = tpu.matmul %92, %93, %cst_24 {dimension_numbers = #tpu.dot_dimension_numbers<[1], [0], [0], [1], [0, 0, 1, 1], [], []>} : vector<16x64xf32>, vector<64x64xf32>, vector<16x64xf32> -> vector<16x64xf32>
    %c0_25 = arith.constant 0 : index
    %c0_26 = arith.constant 0 : index
    %95 = vector.load %arg4[%c0_25, %c0_26] : memref<1x64xf32, #tpu.memory_space<vmem>>, vector<1x64xf32>
    %96 = vector.broadcast %95 : vector<1x64xf32> to vector<16x64xf32>
    %97 = arith.addf %94, %96 : vector<16x64xf32>
    %98 = vector.shape_cast %97 : vector<16x64xf32> to vector<2x8x64xf32>
    %c0_27 = arith.constant 0 : index
    %c0_28 = arith.constant 0 : index
    %c0_29 = arith.constant 0 : index
    %99 = vector.load %arg5[%c0_27, %c0_28, %c0_29] : memref<2x8x64xf32, #tpu.memory_space<vmem>>, vector<2x8x64xf32>
    tpu.vector_store %arg5[%c0_27, %c0_28, %c0_29], %98 {strides = array<i32>} : memref<2x8x64xf32, #tpu.memory_space<vmem>>, vector<2x8x64xf32>,
    return
  }
  func.func @transform_0(%arg0: i32) -> (i32, i32, i32) {
    %c0_i32 = arith.constant 0 : i32
    %c0_i32_0 = arith.constant 0 : i32
    %c0_i32_1 = arith.constant 0 : i32
    return %arg0, %c0_i32, %c0_i32_0 : i32, i32, i32
  }
  func.func @transform_1(%arg0: i32) -> (i32, i32) {
    %c0_i32 = arith.constant 0 : i32
    %c0_i32_0 = arith.constant 0 : i32
    %c0_i32_1 = arith.constant 0 : i32
    return %c0_i32, %c0_i32_0 : i32, i32
  }
  func.func @transform_2(%arg0: i32) -> (i32, i32) {
    %c0_i32 = arith.constant 0 : i32
    %c0_i32_0 = arith.constant 0 : i32
    %c0_i32_1 = arith.constant 0 : i32
    return %c0_i32, %c0_i32_0 : i32, i32
  }
  func.func @transform_3(%arg0: i32) -> (i32, i32) {
    %c0_i32 = arith.constant 0 : i32
    %c0_i32_0 = arith.constant 0 : i32
    %c0_i32_1 = arith.constant 0 : i32
    return %c0_i32, %c0_i32_0 : i32, i32
  }
  func.func @transform_4(%arg0: i32) -> (i32, i32, i32) {
    %c0_i32 = arith.constant 0 : i32
    %c0_i32_0 = arith.constant 0 : i32
    %c0_i32_1 = arith.constant 0 : i32
    return %arg0, %c0_i32, %c0_i32_0 : i32, i32, i32
  }
}

</mosaic_0001>

<bundles_post_ra>
// kernel: tpu_custom_call.1
= control target key start
LH: loop header
LB: loop body
LE: loop exit
PB: predicated region body
PF: predicated region fallthrough
CT: control target
= control target key end

     0   :  { %9 = vsyncpa [#allocation3], 0  ;;  %s2865_s0 = inlined_call_operand.hbm [shape: f32[8,8,64], index: 0, kind: input, shape index: {}]   ;;  %s2866_s1 = inlined_call_operand.hbm [shape: f32[64,192], index: 1, kind: input, shape index: {}]   ;;  %s2867_s2 = inlined_call_operand.hbm [shape: f32[64,64], index: 2, kind: input, shape index: {}]   ;;  %s2868_s3 = inlined_call_operand.vmem [shape: f32[1,64], index: 3, kind: input, shape index: {}]   ;;  %s2869_s4 = inlined_call_operand.hbm [shape: f32[8,8,64], index: 4, kind: output, shape index: {}]  }
   0x1   :  { %11 = vsyncpa [#allocation3 + $0x1], 0 }
   0x2   :  { %12 = vsyncpa [#allocation6], 0 }
   0x3   :  { %13 = vsyncpa [#allocation4], 0 }
   0x4   :  { %15 = vsyncpa [#allocation4 + $0x1], 0  ;;  %s2447_s15 = smov 0   ;;  %s2449_s16 = smov 0  }
   0x5   :  { %s2451_s17 = smov 0   ;;  %s2453_s18 = smov 0  }
   0x6 LB: > { %s2468_s19 = sadd.s32 4294967295, %s2400_s18   ;;  %s1907_s20 = sadd.s32 4294967294, %s2400_s18   ;;  %s2400_s18 = sphi %s2453_s18, %s2888_s18   ;;  %s2396_s17 = sphi %s2451_s17, %s2887_s17   ;;  %s2392_s16 = sphi %s2449_s16, %s2886_s16   ;;  %s2388_s15 = sphi %s2447_s15, %s2885_s15  }
   0x7   : > { %p41_p0 = scmp.ne.s32.totalorder %s2392_s16, %s2388_s15  ;;  %p2870_p1 = scmp.eq.s32.totalorder %s2468_s19, 0 }
   0x8   : > { %p134_p3 = scmp.eq.s32.totalorder %s1907_s20, 3  ;;  %p1908_p5 = scmp.ge.s32.totalorder %s2400_s18, 1 }
   0x9   : > { %p2477_p4 = por %p2870_p1, %p41_p0  ;;  %p141_p7 = scmp.lt.s32.totalorder %s2400_s18, 5 }
   0xa   : > { %p2482_p6 = por %p134_p3, %p41_p0  ;;  %s2402_s24 = smov [#allocation5]  }
   0xb   : > { %s2873_s21 = scalar_select %p2477_p4, 1, 0 }
   0xc   : > { %s2874_s22 = scalar_select %p2482_p6, 1, 0 }
   0xd   : > { %p2487_p8 = pnand %p1908_p5, %p141_p7  ;;  %s153_s25 = sshll.u32 %s2402_s24, 4  ;;  %s154_s25 = int_to_ptr.vmem [resolvable:$true] %s153_s25 }
   0xe   : > { %s2403_s27 = smov [#allocation7]   ;;  %s2244_s5 = scalar_lea.hbm %s2866_s1, 2048 }
   0xf   : > { %s2875_s23 = scalar_select %p2487_p8, 1, 0 }
  0x10   : > { %p2141_p9 = pneg %p2487_p8  ;;  %s166_s28 = sshll.u32 %s2403_s27, 4  ;;  %s2499_s28 = int_to_ptr.vmem [resolvable:$true] %s166_s28 }
  0x11   : > { %p2245_p11 = scmp.ne.s32.totalorder %s2866_s1, %s2244_s5  ;;  %p2251_p3 = scmp.lt.u32.totalorder %s2244_s5, %s2866_s1 }
  0x12   : > { %p2495_p10 = pnand %p2141_p9, %p2870_p1 }
  0x14   : > { %p2246_p12 = pneg %p2495_p10 }
  0x16   : > { %p2247_p13 = pnand %p2246_p12, %p2245_p11 }
  0x18   : > { %p2248_p0 = pneg %p2247_p13 }
  0x1a   : > { %p2253_p5 = pnand %p2251_p3, %p2248_p0 }
  0x1c   : > { %2256 = shalt.err (!%p2253_p5)
}
  0x1d   : > { %s2257_s10 = scalar_lea.vmem %s154_s25, 2048  ;;  %p2265_p2 = scmp.lt.s32.totalorder %s154_s25, %s154_s25 }
  0x1e   : > { %p2258_p7 = scmp.ne.s32.totalorder %s154_s25, %s2257_s10  ;;  %p2266_p6 = scmp.lt.s32.totalorder %s2257_s10, %s2257_s10 }
  0x20   : > { %p2260_p9 = pnand %p2258_p7, %p2246_p12  ;;  %p2267_p4 = por %p2266_p6, %p2265_p2 }
  0x22   : > { %p2261_p1 = pneg %p2260_p9 }
  0x24   : > { %p2268_p8 = pnand %p2267_p4, %p2261_p1 }
  0x26   : > { %2271 = shalt.err (!%p2268_p8)
}
  0x27   : > { %s2404_s11 = smov 256   ;;  %s2405_s12 = smov 16  }
  0x28   : > { %2144 = dma.hbm_to_vmem [thread:$0]  (!%p2495_p10), %s2866_s1, 2048, %s154_s25, [#allocation6], %s2404_s11, %s2404_s11, %s2405_s12  }
  0x29   : > { %s2272_s27 = scalar_lea.hbm %s2867_s2, 1024 }
  0x2a   : > { %p2273_p11 = scmp.ne.s32.totalorder %s2867_s2, %s2272_s27  ;;  %p2279_p4 = scmp.lt.u32.totalorder %s2272_s27, %s2867_s2 }
  0x2c   : > { %p2275_p1 = pnand %p2273_p11, %p2246_p12 }
  0x2e   : > { %p2276_p2 = pneg %p2275_p1 }
  0x30   : > { %p2281_p6 = pnand %p2279_p4, %p2276_p2 }
  0x32   : > { %2284 = shalt.err (!%p2281_p6)
}
  0x33   : > { %s2285_s25 = scalar_lea.vmem %s2499_s28, 1024  ;;  %p2293_p3 = scmp.lt.s32.totalorder %s2499_s28, %s2499_s28 }
  0x34   : > { %p2286_p8 = scmp.ne.s32.totalorder %s2499_s28, %s2285_s25  ;;  %p2294_p5 = scmp.lt.s32.totalorder %s2285_s25, %s2285_s25 }
  0x36   : > { %p2288_p13 = pnand %p2286_p8, %p2246_p12  ;;  %p2295_p7 = por %p2294_p5, %p2293_p3 }
  0x38   : > { %p2289_p0 = pneg %p2288_p13 }
  0x3a   : > { %p2296_p9 = pnand %p2295_p7, %p2289_p0 }
  0x3c   : > { %2299 = shalt.err (!%p2296_p9)
}
  0x3d   : > { %s2406_s7 = smov 128   ;;  %s2407_s8 = smov 8  }
  0x3e   : > { %2147 = dma.hbm_to_vmem [thread:$0]  (!%p2495_p10), %s2867_s2, 1024, %s2499_s28, [#allocation6], %s2406_s7, %s2406_s7, %s2407_s8  }
  0x3f   : > { %s2552_s11 = sadd.s32 1, %s2400_s18   ;;  %s28_s13 = sadd.s32 1, %s2396_s17 }
  0x40   : > { %s25_s12 = ssub.s32 %s2400_s18, %s2552_s11  ;;  %p35_p11 = scmp.ne.s32.totalorder %s2396_s17, %s2392_s16 }
  0x41   : > { %p26_p12 = scmp.eq.s32.totalorder %s25_s12, 0  ;;  %p36_p1 = scmp.eq.s32.totalorder %s2400_s18, 0 }
  0x42   : > { %p2877_p4 = scmp.eq.s32.totalorder %s2468_s19, 3  ;;  %p2158_p8 = scmp.lt.s32.totalorder %s2400_s18, 4 }
  0x43   : > { %s2561_s14 = scalar_select %p26_p12, %s2396_s17, %s28_s13  }
  0x44   : > { %p37_p2 = por %p36_p1, %p35_p11  ;;  %p2565_p6 = por %p2877_p4, %p35_p11 }
  0x45   : > { %s183_s20 = sand.u32 1, %s2396_s17   ;;  %s1954_s28 = sshll.u32 %s2400_s18, 8 }
  0x46   : > { %s1912_s24 = sshll.u32 %s183_s20, 4  ;;  %s2575_s30 = scalar_lea.hbm %s2865_s0, %s1954_s28 }
  0x47   : > { %s187_s5 = scalar_lea.vmem [#allocation2], %s1912_s24  ;;  %p2579_p10 = pnand %p2158_p8, %p37_p2 }
  0x48   : > { %s194_s6 = sshll.u32 %s187_s5, 4  ;;  %s2583_s9 = scalar_lea.sflag [#allocation3], %s183_s20  ;;  %s2577_s6 = int_to_ptr.vmem [resolvable:$true] %s194_s6 }
  0x49   : > { %s2300_s10 = scalar_lea.hbm %s2575_s30, 256  ;;  %p2302_p0 = pneg %p2579_p10 }
  0x4a   : > { %p2301_p13 = scmp.ne.s32.totalorder %s2575_s30, %s2300_s10  ;;  %s2305_s24 = scalar_lea.hbm %s2865_s0, 1024 }
  0x4b   : > { %p2306_p7 = scmp.lt.u32.totalorder %s2575_s30, %s2865_s0  ;;  %p2307_p9 = scmp.lt.u32.totalorder %s2305_s24, %s2300_s10 }
  0x4c   : > { %p2303_p3 = pnand %p2302_p0, %p2301_p13  ;;  %p2309_p11 = scmp.lt.u32.totalorder %s2300_s10, %s2575_s30 }
  0x4d   : > { %p2308_p12 = por %p2307_p9, %p2306_p7 }
  0x4e   : > { %p2304_p5 = pneg %p2303_p3 }
  0x4f   : > { %p2310_p1 = por %p2309_p11, %p2308_p12 }
  0x51   : > { %p2311_p2 = pnand %p2310_p1, %p2304_p5 }
  0x53   : > { %2314 = shalt.err (!%p2311_p2)
}
  0x54   : > { %s2315_s20 = scalar_lea.vmem %s2577_s6, 256  ;;  %s2408_s29 = smov [#allocation2]  }
  0x55   : > { %p2316_p4 = scmp.ne.s32.totalorder %s2577_s6, %s2315_s20  ;;  %s2320_s5 = sshll.u32 %s2408_s29, 4  ;;  %s2321_s5 = int_to_ptr.vmem [resolvable:$false] %s2320_s5 }
  0x56   : > { %s2322_s12 = scalar_lea.vmem %s2321_s5, 512  ;;  %p2323_p3 = scmp.lt.s32.totalorder %s2577_s6, %s2321_s5 }
  0x57   : > { %p2318_p8 = pnand %p2316_p4, %p2302_p0  ;;  %p2324_p7 = scmp.lt.s32.totalorder %s2322_s12, %s2315_s20 }
  0x59   : > { %p2319_p13 = pneg %p2318_p8  ;;  %p2325_p9 = por %p2324_p7, %p2323_p3 }
  0x5b   : > { %p2326_p12 = pnand %p2325_p9, %p2319_p13 }
  0x5d   : > { %2329 = shalt.err (!%p2326_p12)
}
  0x5e   : > { %2151 = dma.hbm_to_vmem [thread:$0]  (!%p2579_p10), %s2575_s30, 256, %s2577_s6, %s2583_s9, %s2406_s7, %s2406_s7, %s2407_s8  }
  0x5f   : > { %p2880_p0 = scmp.ne.s32.totalorder %s2875_s23, 0 }
  0x60   : > { %s2617_s10 = sand.u32 (!%p2880_p0), 1, %s2392_s16   ;;  %p2881_p5 = scmp.ne.s32.totalorder (!%p2880_p0), %s2873_s21, 0 }
  0x61   : > { %206 = sbr.rel (%p2880_p0) target bundleno = 3236 (0xca4), region = 36  ;;  %s1916_s13 = sshll.u32 (!%p2880_p0), %s2617_s10, 4 }
  0x62   : > { %s209_s24 = scalar_lea.sflag (!%p2880_p0), [#allocation3], %s2617_s10  ;;  %s2623_s25 = scalar_lea.vmem (!%p2880_p0), [#allocation2], %s1916_s13 }
  0x68   : > { %2375 = dma.done.wait (%p2881_p5), %s209_s24, 256  }
  0x69   : > { %2377 = vsyncadd (%p2881_p5), %s209_s24, 4294967040  ;;  %p2882_p10 = scmp.eq.s32.totalorder %s2468_s19, 0 }
  0x6b   : > { %2379 = dma.done.wait (%p2882_p10), [#allocation6], 3072   ;;  %p2883_p11 = pmov %p2882_p10 }
  0x6c   : > { %v2409_v0 = vmov 0.0   ;;  %v250_v1 = vld [vmem:[#allocation5 + $0x8] sm:$0xff]  ;;  %v252_v2 = vld [vmem:[#allocation5 + $0x18] sm:$0xff]  ;;  %v249_v3 = vld [vmem:[#allocation5] sm:$0xff]  ;;  %vm265_vm0 = vcmask 523264   ;;  %vm2410_vm1 = vmmov 0   ;;  %v349_v33 = vlaneseq }
  0x6d   : > { %2381 = vsyncadd (%p2883_p11), [#allocation6], 4294964224  ;;  %336 = vmatprep.mubr.f32.mxu0 %v2409_v0  ;;  %2003 = vmatprep.subr.mxu1 %v2409_v0  ;;  %v2097_v4 = vpack.c.bf16 %v252_v2, %v250_v1  ;;  %v251_v5 = vld [vmem:[#allocation5 + $0x10] sm:$0xff]  ;;  %v254_v6 = vld [vmem:[#allocation5 + $0x28] sm:$0xff]  ;;  %s2411_s21 = smov 64   ;;  %vm358_vm2 = vcmask 130048  }
  0x6e   : > { %v256_v7 = vld [vmem:[#allocation5 + $0x38] sm:$0xff]  ;;  %v2099_v8 = vpack.c.bf16 %v251_v5, %v249_v3  ;;  %v253_v10 = vld [vmem:[#allocation5 + $0x20] sm:$0xff]  ;;  %v255_v11 = vld [vmem:[#allocation5 + $0x30] sm:$0xff]  ;;  %2005 = vmatprep.mubr.msk.f32.mxu1 %vm2410_vm1, %v2409_v0  ;;  %v350_v34 = vshrl.u32 %v349_v33, 7  ;;  %v352_v35 = vand.u32 127, %v349_v33  ;;  %vm510_vm4 = vcmask 64512  }
  0x6f   : > { %v2101_v9 = vpack.c.bf16 %v256_v7, %v254_v6  ;;  %v258_v12 = vld [vmem:[#allocation5 + $0x48] sm:$0xff]  ;;  %2098 = vmatprep.subr.bf16.mxu0 %v2097_v4  ;;  %v260_v13 = vld [vmem:[#allocation5 + $0x58] sm:$0xff]  ;;  %v2103_v14 = vpack.c.bf16 %v255_v11, %v253_v10  ;;  %v257_v16 = vld [vmem:[#allocation5 + $0x40] sm:$0xff]  ;;  %v2412_v36 = vmov -1e+30   ;;  %s2413_s23 = smov 48  }
  0x70   : > { %2100 = vmatpush1.bf16.msra.mxu0 %v2099_v8  ;;  %v2105_v15 = vpack.c.bf16 %v260_v13, %v258_v12  ;;  %v259_v17 = vld [vmem:[#allocation5 + $0x50] sm:$0xff]  ;;  %v262_v18 = vld [vmem:[#allocation5 + $0x68] sm:$0xff]  ;;  %v264_v19 = vld [vmem:[#allocation5 + $0x78] sm:$0xff]  ;;  %vm353_vm3 = vcmp.ge.s32.totalorder %v350_v34, %v352_v35  ;;  %s2414_s7 = smov 112   ;;  %s2415_s8 = smov 32   ;;  %vm1697_vm5 = vcmask 261120  }
  0x71   : > { %2102 = vmatprep.subr.bf16.mxu0 %v2101_v9  ;;  %v2107_v20 = vpack.c.bf16 %v259_v17, %v257_v16  ;;  %v2109_v21 = vpack.c.bf16 %v264_v19, %v262_v18  ;;  %v261_v22 = vld [vmem:[#allocation5 + $0x60] sm:$0xff]  ;;  %v263_v23 = vld [vmem:[#allocation5 + $0x70] sm:$0xff]  ;;  %v248_v26 = vld [vmem:[%s2623_s25 + $0x8] sm:$0xff]  ;;  %v2669_v37 = vsel %vm353_vm3, 0.0, %v2412_v36  ;;  %s2416_s30 = smov 96   ;;  %s2417_s6 = smov 16  }
  0x72   : > { %v2111_v24 = vpack.c.bf16 %v263_v23, %v261_v22  ;;  %v247_v25 = vld [vmem:[%s2623_s25] sm:$0xff]  ;;  %s2418_s9 = smov 80   ;;  %vm1700_vm6 = vcmask 392192   ;;  %s244_s28 = scalar_lea.vmem [#allocation8], %s1916_s13 }
  0x73   : > { %s1815_s27 = sshll.u32 %s244_s28, 4  ;;  %s1955_s5 = sshll.u32 %s2468_s19, 8  ;;  %s2815_s27 = int_to_ptr.vmem [resolvable:$true] %s1815_s27 }
  0x74   : > { %2104 = vmatpush1.bf16.msra.mxu0 %v2103_v14  ;;  %s2820_s25 = scalar_lea.hbm %s2869_s4, %s1955_s5  ;;  %s1802_s13 = scalar_lea.sflag [#allocation4], %s2617_s10 }
  0x75   : > { %2106 = vmatprep.subr.bf16.mxu0 %v2105_v15  ;;  %s2330_s19 = scalar_lea.vmem %s2815_s27, 256 }
  0x76   : > { %p2331_p1 = scmp.ne.s32.totalorder %s2815_s27, %s2330_s19 }
  0x78   : > { %2108 = vmatpush1.bf16.msra.mxu0 %v2107_v20  ;;  %p2332_p2 = pnand %p2331_p1, %p2565_p6 }
  0x79   : > { %2110 = vmatprep.subr.bf16.mxu0 %v2109_v21 }
  0x7a   : > { %p2333_p4 = pneg %p2332_p2 }
  0x7c   : > { %2112 = vmatpush1.bf16.msra.mxu0 %v2111_v24 }
  0x7d   : > { %1998 = vmatprep.subr.mxu0 %v2409_v0 }
  0x7f   : > { %1920 = vmatmul.mubr.msk.f32.vlgmr.msra.gmra.mrb[0].mxu0 %vm265_vm0, %v247_v25 }
  0x80   : > { %342 = vmatprep.mubr.f32.mxu0 %v2409_v0 }
  0x83   : > { %1921 = vmatmul.mubr.msk.f32.gmra.mrb[2].mxu0 %vm265_vm0, %v248_v26 }
  0x84   : > { %2000 = vmatprep.mubr.msk.f32.mxu0 %vm2410_vm1, %v2409_v0 }
 0x152   : > { %v2645_v27 = vpop.f32.mrb[0].mxu0 }
 0x153   : > { %356 = vrot.lane.b32.xlu0 %v2645_v27, %s2411_s21  ;;  %v2648_v28 = vpop.f32.mrb[1].mxu0 }
 0x156   : > { %v2650_v29 = vpop.f32.mrb[2].mxu0 }
 0x157   : > { %434 = vrot.lane.b32.xlu0 %v2650_v29, %s2411_s21  ;;  %v2653_v30 = vpop.f32.mrb[3].mxu0  ;;  %s2419_s21 = smov [#allocation8]  }
 0x1c5   : > { %v357_v31 = vpop.permute.xlu0 %356 }
 0x1c6   : > { %1999 = vmatpush3.xpose.msk.msra.mxu0 %vm358_vm2, %v357_v31 }
 0x1c7   : > { %2023 = vmatprep.subr.mxu0 %v2409_v0 }
 0x1c9   : > { %2001 = vmatmul.mubr.msk.f32.vlgmr.msra.gmra.mrb[4].mxu0 %vm358_vm2, %v2645_v27  ;;  %v435_v32 = vpop.permute.xlu0 %434 }
 0x1ca   : > { %2004 = vmatpush3.xpose.msk.msra.mxu1 %vm358_vm2, %v435_v32  ;;  %2025 = vmatprep.mubr.msk.f32.mxu0 %vm2410_vm1, %v2409_v0 }
 0x1cb   : > { %2008 = vmatprep.subr.mxu1 %v2409_v0 }
 0x1cd   : > { %2006 = vmatmul.mubr.msk.f32.vlgmr.msra.gmra.mrb[0].mxu1 %vm358_vm2, %v2650_v29 }
 0x1ce   : > { %2009 = vmatpush3.msra.mxu1 %v2648_v28  ;;  %2010 = vmatprep.mubr.msk.f32.mxu1 %vm2410_vm1, %v2409_v0 }
 0x1cf   : > { %2013 = vmatprep.subr.mxu1 %v2409_v0 }
 0x29c   : > { %v429_v38 = vpop.f32.mrb[4].mxu0 }
 0x29d   : > { %v430_v39 = vadd.f32 %v429_v38, %v2669_v37  ;;  %v2002_v40 = vpop.f32.mrb[5].mxu0 }
 0x29f   : > { %v511_v41 = vsel %vm510_vm4, %v430_v39, -inf }
 0x2a0   : > { %v506_v42 = vpop.f32.mrb[0].mxu1  ;;  %512 = vmax.xlane.f32.xlu1 %v511_v41 }
 0x2a1   : > { %v507_v43 = vadd.f32 %v506_v42, %v2669_v37  ;;  %v2007_v44 = vpop.f32.mrb[1].mxu1 }
 0x2a3   : > { %v514_v45 = vsel %vm510_vm4, %v507_v43, -inf }
 0x2a4   : > { %515 = vmax.xlane.f32.xlu1 %v514_v45 }
 0x2b5   : > { %681 = vrot.lane.b32.xlu1 %v2645_v27, %s2413_s23 }
 0x2b9   : > { %759 = vrot.lane.b32.xlu1 %v2650_v29, %s2413_s23 }
 0x2bd   : > { %679 = vrot.lane.b32.xlu1 %v2645_v27, %s2414_s7 }
 0x32d   : > { %v513_v46 = vpop.xlane.xlu1 %512 }
 0x32e   : > { %v517_v47 = vsub.f32 %v430_v39, %v513_v46 }
 0x330   : > { %v519_v48 = vmul.f32 1.442695, %v517_v47 }
 0x331   : > { %v516_v49 = vpop.xlane.xlu1 %515 }
 0x332   : > { %2212 = vpow2.f32 %v519_v48  ;;  %v518_v50 = vsub.f32 %v507_v43, %v516_v49 }
 0x334   : > { %v521_v51 = vmul.f32 1.442695, %v518_v50 }
 0x335   : > { %v682_v52 = vpop.permute.xlu1 %681 }
 0x336   : > { %2214 = vpow2.f32 %v521_v51 }
 0x339   : > { %v760_v53 = vpop.permute.xlu1 %759 }
 0x33a   : > { %2024 = vmatpush3.xpose.msk.msra.mxu0 %vm358_vm2, %v760_v53 }
 0x33b   : > { %2033 = vmatprep.subr.mxu0 %v2409_v0 }
 0x33c   : > { %v2213_v54 = vpop.eup %2212 }
 0x33d   : > { %v523_v55 = vsel %vm510_vm4, %v2213_v54, 0.0  ;;  %v680_v58 = vpop.permute.xlu1 %679 }
 0x33e   : > { %524 = vadd.xlane.f32.xlu0 %v523_v55 }
 0x340   : > { %v2215_v56 = vpop.eup %2214 }
 0x341   : > { %v526_v57 = vsel %vm510_vm4, %v2215_v56, 0.0 }
 0x342   : > { %527 = vadd.xlane.f32.xlu1 %v526_v57 }
 0x353   : > { %757 = vrot.lane.b32.xlu1 %v2650_v29, %s2414_s7 }
 0x3cb   : > { %v525_v59 = vpop.xlane.xlu0 %524 }
 0x3cc   : > { %2216 = vrcp.f32 %v525_v59 }
 0x3cf   : > { %v528_v60 = vpop.xlane.xlu1 %527 }
 0x3d0   : > { %2218 = vrcp.f32 %v528_v60 }
 0x3d3   : > { %v758_v61 = vpop.permute.xlu1 %757 }
 0x3d4   : > { %2026 = vmatmul.mubr.msk.f32.vlgmr.msra.gmra.mrb[6].mxu0 %vm358_vm2, %v758_v61 }
 0x3d5   : > { %2035 = vmatprep.mubr.msk.f32.mxu0 %vm2410_vm1, %v2409_v0 }
 0x3d6   : > { %v2217_v62 = vpop.eup %2216 }
 0x3d7   : > { %v531_v63 = vmul.f32 %v2217_v62, %v2213_v54 }
 0x3d9   : > { %2011 = vmatmul.mubr.msk.f32.vlgmr.msra.gmra.mrb[2].mxu1 %vm510_vm4, %v531_v63 }
 0x3da   : > { %v2219_v1 = vpop.eup %2218  ;;  %2014 = vmatpush3.msra.mxu1 %v2653_v30  ;;  %2015 = vmatprep.mubr.msk.f32.mxu1 %vm2410_vm1, %v2409_v0 }
 0x3db   : > { %v532_v2 = vmul.f32 %v2219_v1, %v2215_v56  ;;  %2018 = vmatprep.subr.mxu1 %v2409_v0 }
 0x3dd   : > { %2016 = vmatmul.mubr.msk.f32.vlgmr.msra.gmra.mrb[4].mxu1 %vm510_vm4, %v532_v2 }
 0x3de   : > { %2020 = vmatprep.mubr.msk.f32.mxu1 %vm2410_vm1, %v2409_v0 }
 0x3e1   : > { %2019 = vmatpush3.xpose.msk.msra.mxu1 %vm358_vm2, %v682_v52 }
 0x3e2   : > { %2028 = vmatprep.subr.mxu1 %v2409_v0 }
 0x3e4   : > { %2021 = vmatmul.mubr.msk.f32.vlgmr.msra.gmra.mrb[6].mxu1 %vm358_vm2, %v680_v58 }
 0x3e5   : > { %2030 = vmatprep.mubr.msk.f32.mxu1 %vm2410_vm1, %v2409_v0 }
 0x4a7   : > { %v831_v3 = vpop.f32.mrb[6].mxu0 }
 0x4a8   : > { %v832_v4 = vadd.f32 %v831_v3, %v2669_v37  ;;  %v2027_v5 = vpop.f32.mrb[7].mxu0 }
 0x4aa   : > { %v838_v6 = vsel %vm510_vm4, %v832_v4, -inf }
 0x4ab   : > { %839 = vmax.xlane.f32.xlu1 %v838_v6 }
 0x4ac   : > { %v2705_v7 = vpop.f32.mrb[2].mxu1 }
 0x4ad   : > { %v2012_v8 = vpop.f32.mrb[3].mxu1 }
 0x4b0   : > { %v2707_v9 = vpop.f32.mrb[4].mxu1 }
 0x4b1   : > { %v2017_v10 = vpop.f32.mrb[5].mxu1 }
 0x4b7   : > { %v753_v11 = vpop.f32.mrb[6].mxu1 }
 0x4b8   : > { %v754_v12 = vadd.f32 %v753_v11, %v2669_v37  ;;  %v2022_v13 = vpop.f32.mrb[7].mxu1 }
 0x4ba   : > { %v835_v14 = vsel %vm510_vm4, %v754_v12, -inf }
 0x4bb   : > { %836 = vmax.xlane.f32.xlu0 %v835_v14 }
 0x4bc   : > { %1091 = vrot.lane.b32.xlu1 %v2650_v29, %s2415_s8 }
 0x538   : > { %v840_v15 = vpop.xlane.xlu1 %839 }
 0x539   : > { %v842_v16 = vsub.f32 %v832_v4, %v840_v15 }
 0x53b   : > { %v845_v17 = vmul.f32 1.442695, %v842_v16 }
 0x53c   : > { %v1092_v34 = vpop.permute.xlu1 %1091 }
 0x53d   : > { %2220 = vpow2.f32 %v845_v17 }
 0x547   : > { %v2221_v18 = vpop.eup %2220 }
 0x548   : > { %v850_v19 = vsel %vm510_vm4, %v2221_v18, 0.0  ;;  %v837_v20 = vpop.xlane.xlu0 %836 }
 0x549   : > { %851 = vadd.xlane.f32.xlu0 %v850_v19  ;;  %v841_v21 = vsub.f32 %v754_v12, %v837_v20 }
 0x54b   : > { %v843_v22 = vmul.f32 1.442695, %v841_v21 }
 0x54d   : > { %2222 = vpow2.f32 %v843_v22 }
 0x557   : > { %v2223_v23 = vpop.eup %2222 }
 0x558   : > { %v847_v24 = vsel %vm510_vm4, %v2223_v23, 0.0 }
 0x55f   : > { %858 = vrot.lane.b32.xlu0 %v2648_v28, %s2414_s7 }
 0x563   : > { %935 = vrot.lane.b32.xlu0 %v2653_v30, %s2414_s7 }
 0x567   : > { %1013 = vrot.lane.b32.xlu0 %v2645_v27, %s2415_s8 }
 0x586   : > { %848 = vadd.xlane.f32.xlu0 %v847_v24 }
 0x59c   : > { %1011 = vrot.lane.b32.xlu0 %v2645_v27, %s2416_s30 }
 0x5a0   : > { %1089 = vrot.lane.b32.xlu0 %v2650_v29, %s2416_s30 }
 0x5d6   : > { %v852_v25 = vpop.xlane.xlu0 %851 }
 0x5d7   : > { %2224 = vrcp.f32 %v852_v25 }
 0x5da   : > { %v859_v26 = vpop.permute.xlu0 %858 }
 0x5db   : > { %2029 = vmatpush3.msra.mxu1 %v859_v26 }
 0x5dc   : > { %2038 = vmatprep.subr.mxu1 %v2409_v0 }
 0x5de   : > { %v936_v31 = vpop.permute.xlu0 %935 }
 0x5df   : > { %2034 = vmatpush3.msra.mxu0 %v936_v31 }
 0x5e0   : > { %2043 = vmatprep.subr.mxu0 %v2409_v0 }
 0x5e1   : > { %v2225_v32 = vpop.eup %2224 }
 0x5e2   : > { %v856_v33 = vmul.f32 %v2225_v32, %v2221_v18  ;;  %v1014_v35 = vpop.permute.xlu0 %1013 }
 0x5e4   : > { %2036 = vmatmul.mubr.msk.f32.vlgmr.msra.gmra.mrb[8].mxu0 %vm510_vm4, %v856_v33 }
 0x5e5   : > { %2045 = vmatprep.mubr.msk.f32.mxu0 %vm2410_vm1, %v2409_v0 }
 0x5e6   : > { %2044 = vmatpush3.xpose.msk.msra.mxu0 %vm358_vm2, %v1092_v34 }
 0x5e7   : > { %2053 = vmatprep.subr.mxu0 %v2409_v0 }
 0x613   : > { %v849_v36 = vpop.xlane.xlu0 %848 }
 0x614   : > { %2226 = vrcp.f32 %v849_v36 }
 0x617   : > { %v1012_v38 = vpop.permute.xlu0 %1011 }
 0x61b   : > { %v1090_v39 = vpop.permute.xlu0 %1089 }
 0x61c   : > { %2046 = vmatmul.mubr.msk.f32.vlgmr.msra.gmra.mrb[10].mxu0 %vm358_vm2, %v1090_v39 }
 0x61d   : > { %2055 = vmatprep.mubr.msk.f32.mxu0 %vm2410_vm1, %v2409_v0 }
 0x61e   : > { %v2227_v40 = vpop.eup %2226 }
 0x61f   : > { %v855_v41 = vmul.f32 %v2227_v40, %v2223_v23 }
 0x621   : > { %2031 = vmatmul.mubr.msk.f32.vlgmr.msra.gmra.mrb[8].mxu1 %vm510_vm4, %v855_v41 }
 0x622   : > { %2039 = vmatpush3.xpose.msk.msra.mxu1 %vm358_vm2, %v1014_v35  ;;  %2040 = vmatprep.mubr.msk.f32.mxu1 %vm2410_vm1, %v2409_v0 }
 0x623   : > { %2048 = vmatprep.subr.mxu1 %v2409_v0 }
 0x625   : > { %2041 = vmatmul.mubr.msk.f32.vlgmr.msra.gmra.mrb[10].mxu1 %vm358_vm2, %v1012_v38 }
 0x626   : > { %2050 = vmatprep.mubr.msk.f32.mxu1 %vm2410_vm1, %v2409_v0 }
 0x6b7   : > { %v2743_v42 = vpop.f32.mrb[8].mxu0 }
 0x6b8   : > { %v2037_v43 = vpop.f32.mrb[9].mxu0 }
 0x6ef   : > { %v1163_v44 = vpop.f32.mrb[10].mxu0 }
 0x6f0   : > { %v1164_v45 = vadd.f32 %v1163_v44, %v2669_v37  ;;  %v2047_v46 = vpop.f32.mrb[11].mxu0 }
 0x6f1   : > { %v1705_v46 = vld [vmem:[#allocation7 + $0x10] sm:$0xff] }
 0x6f2   : > { %v1170_v47 = vsel %vm510_vm4, %v1164_v45, -inf }
 0x6f3   : > { %1171 = vmax.xlane.f32.xlu1 %v1170_v47 }
 0x6f4   : > { %v2747_v48 = vpop.f32.mrb[8].mxu1 }
 0x6f5   : > { %v2032_v49 = vpop.f32.mrb[9].mxu1 }
 0x6f8   : > { %v1085_v50 = vpop.f32.mrb[10].mxu1 }
 0x6f9   : > { %v1086_v51 = vadd.f32 %v1085_v50, %v2669_v37  ;;  %v2042_v52 = vpop.f32.mrb[11].mxu1  ;;  %v1707_v50 = vld [vmem:[#allocation7 + $0x20] sm:$0xff] }
 0x6fa   : > { %v1709_v52 = vld [vmem:[#allocation7 + $0x30] sm:$0xff] }
 0x6fb   : > { %v1167_v53 = vsel %vm510_vm4, %v1086_v51, -inf }
 0x6fc   : > { %1168 = vmax.xlane.f32.xlu0 %v1167_v53 }
 0x704   : > { %1265 = vrot.lane.b32.xlu1 %v2653_v30, %s2416_s30 }
 0x708   : > { %1343 = vrot.lane.b32.xlu1 %v2645_v27, %s2417_s6 }
 0x70c   : > { %1341 = vrot.lane.b32.xlu1 %v2645_v27, %s2418_s9 }
 0x780   : > { %v1172_v54 = vpop.xlane.xlu1 %1171 }
 0x781   : > { %v1174_v55 = vsub.f32 %v1164_v45, %v1172_v54  ;;  %v1710_v54 = vld [vmem:[#allocation7 + $0x38] sm:$0xff] }
 0x783   : > { %v1177_v56 = vmul.f32 1.442695, %v1174_v55  ;;  %v2125_v55 = vpack.c.bf16 %v1710_v54, %v1709_v52 }
 0x784   : > { %v1266_v57 = vpop.permute.xlu1 %1265 }
 0x785   : > { %2228 = vpow2.f32 %v1177_v56  ;;  %2054 = vmatpush3.msra.mxu0 %v1266_v57 }
 0x786   : > { %2063 = vmatprep.subr.mxu0 %v2409_v0 }
 0x788   : > { %v1344_v10 = vpop.permute.xlu1 %1343 }
 0x789   : > { %v1169_v60 = vpop.xlane.xlu0 %1168 }
 0x78a   : > { %v1173_v61 = vsub.f32 %v1086_v51, %v1169_v60  ;;  %v1708_v51 = vld [vmem:[#allocation7 + $0x28] sm:$0xff] }
 0x78b   : > { %v2121_v53 = vpack.c.bf16 %v1708_v51, %v1707_v50 }
 0x78c   : > { %v1175_v62 = vmul.f32 1.442695, %v1173_v61  ;;  %v1342_v12 = vpop.permute.xlu1 %1341 }
 0x78e   : > { %2230 = vpow2.f32 %v1175_v62 }
 0x78f   : > { %v2229_v58 = vpop.eup %2228 }
 0x790   : > { %v1182_v59 = vsel %vm510_vm4, %v2229_v58, 0.0 }
 0x791   : > { %1183 = vadd.xlane.f32.xlu0 %v1182_v59 }
 0x798   : > { %v2231_v27 = vpop.eup %2230 }
 0x799   : > { %v1179_v63 = vsel %vm510_vm4, %v2231_v27, 0.0 }
 0x7a7   : > { %1189 = vrot.lane.b32.xlu0 %v2648_v28, %s2416_s30 }
 0x7c6   : > { %1180 = vadd.xlane.f32.xlu0 %v1179_v63 }
 0x7dc   : > { %1421 = vrot.lane.b32.xlu0 %v2650_v29, %s2417_s6 }
 0x7e0   : > { %1419 = vrot.lane.b32.xlu0 %v2650_v29, %s2418_s9 }
 0x81e   : > { %v1184_v1 = vpop.xlane.xlu0 %1183 }
 0x81f   : > { %2232 = vrcp.f32 %v1184_v1 }
 0x822   : > { %v1190_v2 = vpop.permute.xlu0 %1189 }
 0x823   : > { %2049 = vmatpush3.msra.mxu1 %v1190_v2 }
 0x824   : > { %2058 = vmatprep.subr.mxu1 %v2409_v0 }
 0x829   : > { %v2233_v3 = vpop.eup %2232 }
 0x82a   : > { %v1188_v4 = vmul.f32 %v2233_v3, %v2229_v58 }
 0x82c   : > { %2056 = vmatmul.mubr.msk.f32.vlgmr.msra.gmra.mrb[12].mxu0 %vm510_vm4, %v1188_v4 }
 0x82d   : > { %2065 = vmatprep.mubr.msk.f32.mxu0 %vm2410_vm1, %v2409_v0 }
 0x853   : > { %v1181_v5 = vpop.xlane.xlu0 %1180 }
 0x854   : > { %2234 = vrcp.f32 %v1181_v5 }
 0x857   : > { %v1422_v6 = vpop.permute.xlu0 %1421 }
 0x858   : > { %2064 = vmatpush3.xpose.msk.msra.mxu0 %vm358_vm2, %v1422_v6 }
 0x859   : > { %2073 = vmatprep.subr.mxu0 %v2409_v0 }
 0x85b   : > { %v1420_v29 = vpop.permute.xlu0 %1419 }
 0x85c   : > { %2066 = vmatmul.mubr.msk.f32.vlgmr.msra.gmra.mrb[14].mxu0 %vm358_vm2, %v1420_v29 }
 0x85d   : > { %2075 = vmatprep.mubr.msk.f32.mxu0 %vm2410_vm1, %v2409_v0 }
 0x85e   : > { %v2235_v8 = vpop.eup %2234 }
 0x85f   : > { %v1187_v11 = vmul.f32 %v2235_v8, %v2231_v27 }
 0x861   : > { %2051 = vmatmul.mubr.msk.f32.vlgmr.msra.gmra.mrb[12].mxu1 %vm510_vm4, %v1187_v11 }
 0x862   : > { %2059 = vmatpush3.xpose.msk.msra.mxu1 %vm358_vm2, %v1344_v10  ;;  %2060 = vmatprep.mubr.msk.f32.mxu1 %vm2410_vm1, %v2409_v0 }
 0x863   : > { %2068 = vmatprep.subr.mxu1 %v2409_v0 }
 0x865   : > { %2061 = vmatmul.mubr.msk.f32.vlgmr.msra.gmra.mrb[14].mxu1 %vm358_vm2, %v1342_v12 }
 0x866   : > { %2070 = vmatprep.mubr.msk.f32.mxu1 %vm2410_vm1, %v2409_v0 }
 0x8ff   : > { %v1337_v13 = vpop.f32.mrb[12].mxu0 }
 0x900   : > { %v2057_v14 = vpop.f32.mrb[13].mxu0 }
 0x92f   : > { %v1493_v15 = vpop.f32.mrb[14].mxu0 }
 0x930   : > { %v1494_v16 = vadd.f32 %v1493_v15, %v2669_v37  ;;  %v2067_v17 = vpop.f32.mrb[15].mxu0 }
 0x932   : > { %v1500_v18 = vsel %vm510_vm4, %v1494_v16, -inf }
 0x933   : > { %1501 = vmax.xlane.f32.xlu0 %v1500_v18 }
 0x934   : > { %v1261_v19 = vpop.f32.mrb[12].mxu1 }
 0x935   : > { %v2052_v20 = vpop.f32.mrb[13].mxu1 }
 0x938   : > { %v1415_v21 = vpop.f32.mrb[14].mxu1 }
 0x939   : > { %v1416_v22 = vadd.f32 %v1415_v21, %v2669_v37  ;;  %v2062_v23 = vpop.f32.mrb[15].mxu1 }
 0x93b   : > { %v1497_v24 = vsel %vm510_vm4, %v1416_v22, -inf }
 0x93c   : > { %1498 = vmax.xlane.f32.xlu1 %v1497_v24 }
 0x9c0   : > { %v1502_v25 = vpop.xlane.xlu0 %1501 }
 0x9c1   : > { %v1504_v0 = vsub.f32 %v1494_v16, %v1502_v25 }
 0x9c3   : > { %v1507_v26 = vmul.f32 1.442695, %v1504_v0 }
 0x9c5   : > { %2236 = vpow2.f32 %v1507_v26 }
 0x9c9   : > { %v1499_v31 = vpop.xlane.xlu1 %1498 }
 0x9ca   : > { %v1503_v32 = vsub.f32 %v1416_v22, %v1499_v31 }
 0x9cc   : > { %v1505_v33 = vmul.f32 1.442695, %v1503_v32 }
 0x9ce   : > { %2238 = vpow2.f32 %v1505_v33 }
 0x9cf   : > { %v2237_v34 = vpop.eup %2236 }
 0x9d0   : > { %v1512_v35 = vsel %vm510_vm4, %v2237_v34, 0.0 }
 0x9d1   : > { %1513 = vadd.xlane.f32.xlu1 %v1512_v35 }
 0x9d8   : > { %v2239_v36 = vpop.eup %2238 }
 0x9d9   : > { %v1509_v38 = vsel %vm510_vm4, %v2239_v36, 0.0 }
 0x9da   : > { %1510 = vadd.xlane.f32.xlu0 %v1509_v38 }
 0x9e2   : > { %1595 = vrot.lane.b32.xlu1 %v2653_v30, %s2418_s9 }
 0x9e6   : > { %1673 = vrot.lane.b32.xlu1 %v2747_v48, %s2417_s6  ;;  %v1706_v48 = vld [vmem:[#allocation7 + $0x18] sm:$0xff] }
 0x9e7   : > { %v2117_v49 = vpack.c.bf16 %v1706_v48, %v1705_v46 }
 0x9ea   : > { %1681 = vrot.lane.b32.xlu1 %v1261_v19, %s2415_s8 }
 0x9f0   : > { %1519 = vrot.lane.b32.xlu0 %v2648_v28, %s2418_s9  ;;  %v1703_v28 = vld [vmem:[#allocation7] sm:$0xff] }
 0x9f4   : > { %1675 = vrot.lane.b32.xlu0 %v2743_v42, %s2417_s6  ;;  %v1704_v42 = vld [vmem:[#allocation7 + $0x8] sm:$0xff] }
 0x9f5   : > { %v2113_v47 = vpack.c.bf16 %v1704_v42, %v1703_v28 }
 0x9f8   : > { %1683 = vrot.lane.b32.xlu0 %v1337_v13, %s2415_s8 }
 0xa5e   : > { %v1514_v37 = vpop.xlane.xlu1 %1513 }
 0xa5f   : > { %2240 = vrcp.f32 %v1514_v37 }
 0xa62   : > { %v1596_v39 = vpop.permute.xlu1 %1595 }
 0xa63   : > { %2074 = vmatpush3.msra.mxu0 %v1596_v39 }
 0xa66   : > { %v1674_v61 = vpop.permute.xlu1 %1673 }
 0xa67   : > { %v1511_v40 = vpop.xlane.xlu0 %1510  ;;  %v1695_v63 = vsel %vm358_vm2, %v2705_v7, %v1674_v61  ;;  %v1946_v7 = vld [vmem:[%s2868_s3] ss:$0 sm:$0xff] }
 0xa68   : > { %2242 = vrcp.f32 %v1511_v40 }
 0xa69   : > { %v2241_v30 = vpop.eup %2240 }
 0xa6a   : > { %v1518_v41 = vmul.f32 %v2241_v30, %v2237_v34  ;;  %v1682_v27 = vpop.permute.xlu1 %1681 }
 0xa6b   : > { %v1520_v43 = vpop.permute.xlu0 %1519  ;;  %v1698_v2 = vsel %vm1697_vm5, %v1695_v63, %v1682_v27 }
 0xa6c   : > { %2069 = vmatpush3.msra.mxu1 %v1520_v43  ;;  %2076 = vmatmul.mubr.msk.f32.vlgmr.msra.gmra.mrb[16].mxu0 %vm510_vm4, %v1518_v41 }
 0xa6d   : > { %2114 = vmatprep.subr.bf16.mxu1 %v2113_v47 }
 0xa6f   : > { %v1676_v60 = vpop.permute.xlu0 %1675 }
 0xa70   : > { %v1696_v3 = vsel %vm358_vm2, %v2707_v9, %v1676_v60 }
 0xa72   : > { %v2243_v44 = vpop.eup %2242 }
 0xa73   : > { %v1517_v45 = vmul.f32 %v2243_v44, %v2239_v36  ;;  %v1684_v62 = vpop.permute.xlu0 %1683 }
 0xa74   : > { %v1699_v5 = vsel %vm1697_vm5, %v1696_v3, %v1684_v62 }
 0xa75   : > { %2071 = vmatmul.mubr.msk.f32.vlgmr.msra.gmra.mrb[16].mxu1 %vm510_vm4, %v1517_v45 }
 0xa76   : > { %2116 = vmatpush3.bf16.msra.mxu1 %v2113_v47 }
 0xa77   : > { %2118 = vmatprep.subr.bf16.mxu1 %v2117_v49 }
 0xa7a   : > { %2120 = vmatpush3.bf16.msra.mxu1 %v2117_v49 }
 0xa7b   : > { %2122 = vmatprep.subr.bf16.mxu1 %v2121_v53 }
 0xa7e   : > { %2124 = vmatpush3.bf16.msra.mxu1 %v2121_v53 }
 0xa7f   : > { %2126 = vmatprep.subr.bf16.mxu1 %v2125_v55 }
 0xa82   : > { %2128 = vmatpush3.bf16.msra.mxu1 %v2125_v55 }
 0xb3f   : > { %v1667_v56 = vpop.f32.mrb[16].mxu0 }
 0xb40   : > { %1691 = vrot.lane.b32.xlu0 %v1667_v56, %s2413_s23  ;;  %v2077_v57 = vpop.f32.mrb[17].mxu0 }
 0xb48   : > { %v1591_v58 = vpop.f32.mrb[16].mxu1 }
 0xb49   : > { %1689 = vrot.lane.b32.xlu1 %v1591_v58, %s2413_s23  ;;  %v2072_v59 = vpop.f32.mrb[17].mxu1  ;;  %s2334_s23 = sshll.u32 %s2419_s21, 4  ;;  %s2335_s23 = int_to_ptr.vmem [resolvable:$false] %s2334_s23 }
 0xb4a   : > { %s2336_s7 = scalar_lea.vmem %s2335_s23, 512  ;;  %p2337_p8 = scmp.lt.s32.totalorder %s2815_s27, %s2335_s23 }
 0xb4b   : > { %p2338_p13 = scmp.lt.s32.totalorder %s2336_s7, %s2330_s19 }
 0xb4d   : > { %p2339_p3 = por %p2338_p13, %p2337_p8 }
 0xb4f   : > { %p2340_p7 = pnand %p2339_p3, %p2333_p4 }
 0xbb2   : > { %v1692_v1 = vpop.permute.xlu0 %1691 }
 0xbb3   : > { %v1702_v29 = vsel %vm1700_vm6, %v1699_v5, %v1692_v1 }
 0xbbb   : > { %v1690_v4 = vpop.permute.xlu1 %1689 }
 0xbbc   : > { %v1701_v6 = vsel %vm1700_vm6, %v1698_v2, %v1690_v4 }
 0xbbd   : > { %2094 = vmatprep.mubr.msk.f32.mxu1 %vm265_vm0, %v1701_v6 }
 0xbbe   : > { %2095 = vmatmul.mubr.msk.f32.vlgmr.msra.gmra.mrb[18].mxu1 %vm265_vm0, %v1702_v29 }
 0xc91   : > { %v2096_v8 = vpop.f32.mrb[18].mxu1 }
 0xc92   : > { %v1796_v9 = vadd.f32 %v2096_v8, %v1946_v7  ;;  %v1790_v10 = vpop.f32.mrb[19].mxu1 }
 0xc93   : > { %v1791_v11 = vadd.f32 %v1946_v7, %v1790_v10 }
 0xc94   : > { %1800 = vst.msk [vmem:[%s244_s28 + $0x8] sm:$0xff] %vm265_vm0, %v1796_v9 }
 0xc95   : > { %1799 = vst.msk [vmem:[%s244_s28] sm:$0xff] %vm265_vm0, %v1791_v11 }
 0xc96   : > { %2343 = shalt.err (!%p2340_p7)
}
 0xc97   : > { %s2344_s8 = scalar_lea.hbm %s2820_s25, 256  ;;  %s2348_s9 = scalar_lea.hbm %s2869_s4, 1024 }
 0xc98   : > { %p2345_p9 = scmp.ne.s32.totalorder %s2820_s25, %s2344_s8  ;;  %p2349_p5 = scmp.lt.u32.totalorder %s2820_s25, %s2869_s4 }
 0xc99   : > { %p2350_p10 = scmp.lt.u32.totalorder %s2348_s9, %s2344_s8  ;;  %p2352_p1 = scmp.lt.u32.totalorder %s2344_s8, %s2820_s25 }
 0xc9a   : > { %p2346_p12 = pnand %p2345_p9, %p2565_p6 }
 0xc9b   : > { %p2351_p11 = por %p2350_p10, %p2349_p5 }
 0xc9c   : > { %p2347_p0 = pneg %p2346_p12 }
 0xc9d   : > { %p2353_p2 = por %p2352_p1, %p2351_p11 }
 0xc9f   : > { %p2354_p4 = pnand %p2353_p2, %p2347_p0 }
 0xca1   : > { %2357 = shalt.err (!%p2354_p4)
}
 0xca2   : > { %s2420_s29 = smov 128   ;;  %s2421_s5 = smov 8  }
 0xca3   : > { %2139 = dma.vmem_to_hbm [thread:$0]  (%p2565_p6), %s2815_s27, 256, %s2820_s25, %s1802_s13, %s2420_s29, %s2420_s29, %s2421_s5  }
 0xca4 PF: > { %p2161_p8 = scmp.ge.s32.totalorder %s2400_s18, 2  ;;  %s1830_s12 = sand.u32 1, %s2388_s15  }
 0xca5   : > { %p2884_p13 = scmp.ne.s32.totalorder %s2874_s22, 0  ;;  %s1831_s24 = scalar_lea.sflag [#allocation4], %s1830_s12 }
 0xca7   : > { %p2153_p3 = pnand %p2161_p8, %p2884_p13 }
 0xca9   : > { %2383 = dma.done.wait (!%p2153_p3), %s1831_s24, 256  }
 0xcaa   : > { %2385 = vsyncadd (!%p2153_p3), %s1831_s24, 4294967040  ;;  %p18_p7 = scmp.ge.s32.totalorder %s2552_s11, 6   ;;  %s2885_s15 = smov %s2392_s16 }
 0xcab   : > { %s2886_s16 = smov %s2396_s17  ;;  %s2887_s17 = smov %s2561_s14 }
 0xcac   : > { %s2888_s18 = smov %s2552_s11  ;;  %20 = sbr.rel (!%p18_p7) target bundleno = 6 (0x6), region = 89 }
 0xcb3   :  { %1836 = vsyncpa [#allocation3], 1 }
 0xcb4   :  { %1838 = vsyncpa [#allocation3 + $0x1], 1 }
 0xcb5   :  { %1839 = vsyncpa [#allocation6], 1 }
 0xcb6   :  { %1840 = vsyncpa [#allocation4], 1 }
 0xcb7   :  { %1842 = vsyncpa [#allocation4 + $0x1], 1 }

</bundles_post_ra>
